<compile_context>
chip_gen: v7x
topology: tpu7x:2x2x1
jax: 0.10.0
libtpu: 0.0.40
codegen_flags: <defaults>
</compile_context>

<pallas_src>
import functools

import jax
import jax.numpy as jnp
from jax import lax
from jax.experimental import pallas as pl
from jax.experimental.pallas import tpu as pltpu


# ----------------------------------------------------------------------------
# Pallas kernel: one fused gate matmul (W_all^T @ [cx | im2col(x)]^T) + bias,
# then the DAS/LSTM-ish gating, all on lane-dense (rows=channels, lanes=pixels)
# tiles.
# ----------------------------------------------------------------------------
def das_kernel(xh_ref, w_ref, b_ref, hy_ref, *, chid):
    xh = xh_ref[...]                      # (K_total, TILE_N) bf16, rows 0:chid = cx^T
    w = w_ref[...]                        # (4*Chid, K_total) bf16

    # Single MXU dot: M=4*Chid, K=K_total, N=TILE_N (lane-dense output).
    gates = jnp.dot(w, xh, preferred_element_type=jnp.float32) + b_ref[...]

    g_in = gates[0 * chid:1 * chid, :]    # (Chid, TILE_N), sublane-aligned slices
    g_c0 = gates[1 * chid:2 * chid, :]
    g_c1 = gates[2 * chid:3 * chid, :]
    g_o = gates[3 * chid:4 * chid, :]

    cx_t = xh[:chid, :].astype(jnp.float32)   # hidden/cell state cx^T in f32

    ingate0 = jnp.maximum(g_in, 0.0)          # relu(ingate)
    ingate1 = jnp.maximum(-g_in, 0.0)         # relu(-ingate)
    cell0 = jnp.tanh(g_c0)
    cell1 = jnp.tanh(g_c1)
    outgate = jax.nn.sigmoid(g_o)

    cy = ingate0 * cell0 + ingate1 * cell1
    hy = outgate * jnp.tanh(cx_t) + cy
    hy_ref[...] = hy.astype(hy_ref.dtype)


def _round_up(v, m):
    return -(-v // m) * m


# ----------------------------------------------------------------------------
# Wrapper: channel-major im2col + weight stacking (plain JAX glue),
# hot path in a single pallas_call.
# ----------------------------------------------------------------------------
def das_forward(x_nchw, cx_nchw, w_ih_hwio, b_ih, w_hh_hwio, b_hh,
                *, tile_n=512):
    kh, kw, cin, gate_ch = w_ih_hwio.shape
    chid = gate_ch // 4
    b, _, hgt, wid = x_nchw.shape
    ho, wo = hgt - kh + 1, wid - kw + 1              # padding=0 ("VALID")
    assert cx_nchw.shape == (b, chid, ho, wo)

    n = b * ho * wo
    k_ih = kh * kw * cin
    k_tot = chid + k_ih

    # Tile sizing: big tiles amortize per-step overhead, but keep >=2 grid
    # steps when there is enough work so v7x can shard across its 2 TCs.
    tile = max(128, min(_round_up(tile_n, 128), _round_up(max(n // 2, 1), 128)))
    n_pad = _round_up(n, tile)

    # Channel-major (transposed) activations: rows = features, lanes = pixels.
    # NOTE: the 3x3 im2col below still streams ~9x the bytes of `x` through HBM.
    # TODO(synk): do the unfold in-kernel from a halo'd raw-x slab (manual DMA)
    # to remove the 9x input blow-up for a memory-bound kernel.
    x_c = jnp.transpose(x_nchw, (1, 0, 2, 3))        # (Cin, B, H, W)
    cx_c = jnp.transpose(cx_nchw, (1, 0, 2, 3))      # (Chid, B, Ho, Wo)
    taps = [x_c[:, :, dy:dy + ho, dx:dx + wo].reshape(cin, n)
            for dy in range(kh) for dx in range(kw)]
    xh_t = jnp.concatenate([cx_c.reshape(chid, n)] + taps, axis=0)  # (K_tot, N)
    xh_t = jnp.pad(xh_t, ((0, 0), (0, n_pad - n))).astype(jnp.bfloat16)

    # Stack all gate weights into one matmul operand (bf16 for the MXU).
    w_ih_flat = w_ih_hwio.reshape(k_ih, gate_ch)     # rows: (dy,dx) major, cin minor
    w_hh_flat = w_hh_hwio.reshape(chid, gate_ch)
    w_all_t = jnp.concatenate([w_hh_flat, w_ih_flat], axis=0).T      # (4*Chid, K_tot)
    w_all_t = w_all_t.astype(jnp.bfloat16)
    bias = (b_ih + b_hh).reshape(gate_ch, 1).astype(jnp.float32)     # (4*Chid, 1)

    kernel = functools.partial(das_kernel, chid=chid)
    out_t = pl.pallas_call(
        kernel,
        out_shape=jax.ShapeDtypeStruct((chid, n_pad), jnp.float32),
        grid_spec=pltpu.PrefetchScalarGridSpec(
            num_scalar_prefetch=0,
            grid=(n_pad // tile,),
            in_specs=[
                pl.BlockSpec((k_tot, tile), lambda i: (0, i)),       # xh^T tile
                pl.BlockSpec((gate_ch, k_tot), lambda i: (0, 0)),    # fused weights
                pl.BlockSpec((gate_ch, 1), lambda i: (0, 0)),        # fused bias
            ],
            out_specs=pl.BlockSpec((chid, tile), lambda i: (0, i)),  # hy^T tile
        ),
        compiler_params=pltpu.CompilerParams(
            dimension_semantics=("parallel",)),
    )(xh_t, w_all_t, bias)

    hy_t = out_t[:, :n]                                   # drop lane padding
    return hy_t.reshape(chid, b, ho, wo).transpose(1, 0, 2, 3)   # NCHW


# ----------------------------------------------------------------------------
# Pure-JAX reference (same weights) for correctness checks.
# ----------------------------------------------------------------------------
def das_reference(x_nchw, cx_nchw, w_ih_hwio, b_ih, w_hh_hwio, b_hh):
    x = jnp.transpose(x_nchw, (0, 2, 3, 1))
    cx = jnp.transpose(cx_nchw, (0, 2, 3, 1))
    dn = ("NHWC", "HWIO", "NHWC")
    g1 = lax.conv_general_dilated(x, w_ih_hwio, (1, 1), "VALID",
                                  dimension_numbers=dn) + b_ih
    g2 = lax.conv_general_dilated(cx, w_hh_hwio, (1, 1), "VALID",
                                  dimension_numbers=dn) + b_hh
    gates = g1 + g2
    gi, gc0, gc1, go = jnp.split(gates, 4, axis=-1)
    in0 = jax.nn.relu(gi)
    in1 = jax.nn.relu(-gi)
    c0 = jnp.tanh(gc0)
    c1 = jnp.tanh(gc1)
    og = jax.nn.sigmoid(go)
    cy = in0 * c0 + in1 * c1
    hy = og * jnp.tanh(cx) + cy
    return jnp.transpose(hy, (0, 3, 1, 2))


if __name__ == "__main__":
    # Module hyper-params (PyTorch defaults): kernel_size=3, padding=0,
    # hidden_kernel_size=1, bias=True.
    B, Cin, H, W = 2, 4, 16, 16
    Chid = 8
    kh = kw = 3
    Ho, Wo = H - kh + 1, W - kw + 1          # 14, 14
    gate_ch = 4 * Chid

    key = jax.random.PRNGKey(0)
    kx, kh_, kw1, kb1, kw2, kb2 = jax.random.split(key, 6)

    x = jax.random.normal(kx, (B, Cin, H, W), jnp.float32)
    cx = jax.random.normal(kh_, (B, Chid, Ho, Wo), jnp.float32)

    # Deterministic synthetic parameters (nn.Conv2d-equivalent, stored HWIO).
    w_ih = jax.random.normal(kw1, (kh, kw, Cin, gate_ch), jnp.float32) * 0.1
    b_ih = jax.random.normal(kb1, (gate_ch,), jnp.float32) * 0.1
    w_hh = jax.random.normal(kw2, (1, 1, Chid, gate_ch), jnp.float32) * 0.1
    b_hh = jax.random.normal(kb2, (gate_ch,), jnp.float32) * 0.1

    hy = das_forward(x, cx, w_ih, b_ih, w_hh, b_hh)
    hy = jax.block_until_ready(hy)
    assert hy.shape == (B, Chid, Ho, Wo)

    # Tight check: reference evaluated on the same bf16-rounded activations and
    # weights (bf16 products are exact in f32) isolates kernel correctness from
    # quantization error.
    q = lambda a: a.astype(jnp.bfloat16).astype(jnp.float32)
    hy_ref_q = das_reference(q(x), q(cx), q(w_ih), b_ih, q(w_hh), b_hh)
    assert jnp.allclose(hy, hy_ref_q, rtol=1e-3, atol=1e-3), \
        "mismatch vs bf16-quantized reference"

    # Loose sanity check vs the full-f32 reference (bounds the bf16 streaming
    # quantization error introduced by the perf-motivated bf16 cast).
    hy_ref = das_reference(x, cx, w_ih, b_ih, w_hh, b_hh)
    assert jnp.allclose(hy, hy_ref, rtol=3e-2, atol=3e-2), \
        "mismatch vs f32 reference"

    print("KERNEL_OK")
</pallas_src>

<mosaic_0001>
module attributes {stable_mosaic.version = 11 : i64} {
  func.func @das_kernel(%arg0: i32, %arg1: memref<44x256xbf16, #tpu.memory_space<vmem>>, %arg2: memref<32x44xbf16, #tpu.memory_space<vmem>>, %arg3: memref<32x1xf32, #tpu.memory_space<vmem>>, %arg4: memref<8x256xf32, #tpu.memory_space<vmem>>) attributes {dimension_semantics = [#tpu.dimension_semantics<parallel>], iteration_bounds = array<i64: 2>, scalar_prefetch = 0 : i64, scratch_operands = 0 : i64, tpu.core_type = #tpu.core_type<tc>, window_params = [{transform_indices = @transform_0, window_bounds = array<i64: 44, 256>}, {pipeline_mode = #tpu.pipeline_mode<synchronous>, transform_indices = @transform_1, window_bounds = array<i64: 32, 44>}, {pipeline_mode = #tpu.pipeline_mode<synchronous>, transform_indices = @transform_2, window_bounds = array<i64: 32, 1>}, {transform_indices = @transform_3, window_bounds = array<i64: 8, 256>}]} {
    %c0 = arith.constant 0 : index
    %c0_0 = arith.constant 0 : index
    %0 = vector.load %arg1[%c0, %c0_0] : memref<44x256xbf16, #tpu.memory_space<vmem>>, vector<44x256xbf16>
    %c0_1 = arith.constant 0 : index
    %c0_2 = arith.constant 0 : index
    %1 = vector.load %arg2[%c0_1, %c0_2] : memref<32x44xbf16, #tpu.memory_space<vmem>>, vector<32x44xbf16>
    %cst = arith.constant dense<0.000000e+00> : vector<32x256xf32>
    %2 = tpu.matmul %1, %0, %cst {dimension_numbers = #tpu.dot_dimension_numbers<[1], [0], [0], [1], [0, 0, 1, 1], [], []>} : vector<32x44xbf16>, vector<44x256xbf16>, vector<32x256xf32> -> vector<32x256xf32>
    %c0_3 = arith.constant 0 : index
    %c0_4 = arith.constant 0 : index
    %3 = vector.load %arg3[%c0_3, %c0_4] : memref<32x1xf32, #tpu.memory_space<vmem>>, vector<32x1xf32>
    %4 = vector.broadcast %3 : vector<32x1xf32> to vector<32x256xf32>
    %5 = arith.addf %2, %4 : vector<32x256xf32>
    %6 = vector.extract_strided_slice %5 {offsets = [0, 0], sizes = [8, 256], strides = [1, 1]} : vector<32x256xf32> to vector<8x256xf32>
    %7 = vector.extract_strided_slice %5 {offsets = [8, 0], sizes = [8, 256], strides = [1, 1]} : vector<32x256xf32> to vector<8x256xf32>
    %8 = vector.extract_strided_slice %5 {offsets = [16, 0], sizes = [8, 256], strides = [1, 1]} : vector<32x256xf32> to vector<8x256xf32>
    %9 = vector.extract_strided_slice %5 {offsets = [24, 0], sizes = [8, 256], strides = [1, 1]} : vector<32x256xf32> to vector<8x256xf32>
    %10 = vector.extract_strided_slice %0 {offsets = [0, 0], sizes = [8, 256], strides = [1, 1]} : vector<44x256xbf16> to vector<8x256xbf16>
    %11 = arith.extf %10 : vector<8x256xbf16> to vector<8x256xf32>
    %cst_5 = arith.constant 0.000000e+00 : f32
    %12 = vector.broadcast %cst_5 : f32 to vector<8x256xf32>
    %13 = arith.maximumf %6, %12 : vector<8x256xf32>
    %cst_6 = arith.constant 0.000000e+00 : f32
    %14 = vector.broadcast %cst_6 : f32 to vector<8x256xf32>
    %15 = arith.subf %14, %6 : vector<8x256xf32>
    %cst_7 = arith.constant 0.000000e+00 : f32
    %16 = vector.broadcast %cst_7 : f32 to vector<8x256xf32>
    %17 = arith.maximumf %15, %16 : vector<8x256xf32>
    %18 = math.tanh %7 : vector<8x256xf32>
    %19 = math.tanh %8 : vector<8x256xf32>
    %20 = arith.negf %9 : vector<8x256xf32>
    %21 = math.exp %20 : vector<8x256xf32>
    %cst_8 = arith.constant 1.000000e+00 : f32
    %22 = vector.broadcast %cst_8 : f32 to vector<8x256xf32>
    %23 = arith.addf %22, %21 : vector<8x256xf32>
    %24 = arith.divf %22, %23 : vector<8x256xf32>
    %25 = arith.mulf %13, %18 : vector<8x256xf32>
    %26 = arith.mulf %17, %19 : vector<8x256xf32>
    %27 = arith.addf %25, %26 : vector<8x256xf32>
    %28 = math.tanh %11 : vector<8x256xf32>
    %29 = arith.mulf %24, %28 : vector<8x256xf32>
    %30 = arith.addf %29, %27 : vector<8x256xf32>
    %c0_9 = arith.constant 0 : index
    %c0_10 = arith.constant 0 : index
    %31 = vector.load %arg4[%c0_9, %c0_10] : memref<8x256xf32, #tpu.memory_space<vmem>>, vector<8x256xf32>
    tpu.vector_store %arg4[%c0_9, %c0_10], %30 {strides = array<i32>} : memref<8x256xf32, #tpu.memory_space<vmem>>, vector<8x256xf32>,
    return
  }
  func.func @transform_0(%arg0: i32) -> (i32, i32) {
    %c0_i32 = arith.constant 0 : i32
    %c0_i32_0 = arith.constant 0 : i32
    return %c0_i32, %arg0 : i32, i32
  }
  func.func @transform_1(%arg0: i32) -> (i32, i32) {
    %c0_i32 = arith.constant 0 : i32
    %c0_i32_0 = arith.constant 0 : i32
    %c0_i32_1 = arith.constant 0 : i32
    return %c0_i32, %c0_i32_0 : i32, i32
  }
  func.func @transform_2(%arg0: i32) -> (i32, i32) {
    %c0_i32 = arith.constant 0 : i32
    %c0_i32_0 = arith.constant 0 : i32
    %c0_i32_1 = arith.constant 0 : i32
    return %c0_i32, %c0_i32_0 : i32, i32
  }
  func.func @transform_3(%arg0: i32) -> (i32, i32) {
    %c0_i32 = arith.constant 0 : i32
    %c0_i32_0 = arith.constant 0 : i32
    return %c0_i32, %arg0 : i32, i32
  }
}

</mosaic_0001>

<bundles_post_ra>
// kernel: tpu_custom_call.1
= control target key start
LH: loop header
LB: loop body
LE: loop exit
PB: predicated region body
PF: predicated region fallthrough
CT: control target
= control target key end

     0   :  { %8 = vsyncpa [#allocation3], 0  ;;  %s876_s0 = inlined_call_operand.hbm [shape: bf16[44,512], index: 0, kind: input, shape index: {}]   ;;  %s877_s1 = inlined_call_operand.vmem [shape: bf16[32,44], index: 1, kind: input, shape index: {}]   ;;  %s878_s2 = inlined_call_operand.vmem [shape: f32[32,1], index: 2, kind: input, shape index: {}]   ;;  %s879_s3 = inlined_call_operand.hbm [shape: f32[8,512], index: 3, kind: output, shape index: {}]  }
   0x1   :  { %10 = vsyncpa [#allocation3 + $0x1], 0 }
   0x2   :  { %11 = vsyncpa [#allocation4], 0 }
   0x3   :  { %13 = vsyncpa [#allocation4 + $0x1], 0  ;;  %s695_s12 = smov 0   ;;  %s697_s13 = smov 0  }
   0x4   :  { %s699_s14 = smov 0   ;;  %s701_s15 = smov 0  }
   0x5 LB: > { %s716_s16 = sadd.s32 4294967295, %s667_s15   ;;  %s454_s17 = sadd.s32 4294967294, %s667_s15   ;;  %s667_s15 = sphi %s701_s15, %s892_s15   ;;  %s663_s14 = sphi %s699_s14, %s891_s14   ;;  %s659_s13 = sphi %s697_s13, %s890_s13   ;;  %s655_s12 = sphi %s695_s12, %s889_s12  }
   0x6   : > { %s720_s18 = sadd.s32 1, %s667_s15   ;;  %s26_s19 = sadd.s32 1, %s663_s14 }
   0x7   : > { %s23_s20 = ssub.s32 %s667_s15, %s720_s18  ;;  %p33_p0 = scmp.ne.s32.totalorder %s663_s14, %s659_s13 }
   0x8   : > { %p24_p1 = scmp.eq.s32.totalorder %s23_s20, 0  ;;  %p34_p2 = scmp.eq.s32.totalorder %s667_s15, 0 }
   0x9   : > { %p39_p3 = scmp.ne.s32.totalorder %s659_s13, %s655_s12  ;;  %p40_p4 = scmp.eq.s32.totalorder %s716_s16, 0 }
   0xa   : > { %s732_s21 = scalar_select %p24_p1, %s663_s14, %s26_s19  }
   0xb   : > { %p35_p5 = por %p34_p2, %p33_p0  ;;  %p734_p6 = por %p40_p4, %p39_p3 }
   0xc   : > { %p105_p7 = scmp.eq.s32.totalorder %s716_s16, 1  ;;  %p111_p8 = scmp.eq.s32.totalorder %s454_s17, 1 }
   0xd   : > { %p501_p10 = scmp.lt.s32.totalorder %s667_s15, 2  ;;  %s137_s25 = sand.u32 1, %s663_s14  }
   0xe   : > { %p741_p11 = por %p105_p7, %p33_p0  ;;  %p745_p12 = por %p111_p8, %p39_p3 }
   0xf   : > { %s479_s26 = sshll.u32 %s667_s15, 7  ;;  %s487_s27 = smul.u32 48, %s137_s25 }
  0x10   : > { %s882_s23 = scalar_select %p741_p11, 1, 0 }
  0x11   : > { %s883_s24 = scalar_select %p745_p12, 1, 0 }
  0x12   : > { %s754_s30 = scalar_lea.hbm %s876_s0, %s479_s26  ;;  %p756_p13 = pnand %p501_p10, %p35_p5 }
  0x13   : > { %s141_s5 = scalar_lea.vmem [#allocation2], %s487_s27  ;;  %s763_s7 = scalar_lea.sflag [#allocation3], %s137_s25 }
  0x14   : > { %s148_s6 = sshll.u32 %s141_s5, 4  ;;  %s571_s8 = scalar_lea.hbm %s754_s30, 768  ;;  %s760_s6 = int_to_ptr.vmem [resolvable:$true] %s148_s6 }
  0x15   : > { %p572_p1 = scmp.ne.s32.totalorder %s754_s30, %s571_s8  ;;  %p573_p2 = pneg %p756_p13 }
  0x16   : > { %s576_s11 = scalar_lea.hbm %s876_s0, 1536  ;;  %p577_p5 = scmp.lt.u32.totalorder %s754_s30, %s876_s0 }
  0x17   : > { %p574_p3 = pnand %p573_p2, %p572_p1  ;;  %p578_p7 = scmp.lt.u32.totalorder %s576_s11, %s571_s8 }
  0x18   : > { %p580_p10 = scmp.lt.u32.totalorder %s571_s8, %s754_s30 }
  0x19   : > { %p575_p4 = pneg %p574_p3  ;;  %p579_p8 = por %p578_p7, %p577_p5 }
  0x1b   : > { %p581_p9 = por %p580_p10, %p579_p8 }
  0x1d   : > { %p582_p0 = pnand %p581_p9, %p575_p4 }
  0x1f   : > { %585 = shalt.err (!%p582_p0)
}
  0x20   : > { %s586_s20 = scalar_lea.vmem %s760_s6, 768  ;;  %s669_s25 = smov [#allocation2]  }
  0x21   : > { %p587_p1 = scmp.ne.s32.totalorder %s760_s6, %s586_s20  ;;  %s591_s26 = sshll.u32 %s669_s25, 4  ;;  %s592_s26 = int_to_ptr.vmem [resolvable:$false] %s591_s26 }
  0x22   : > { %s593_s27 = scalar_lea.vmem %s592_s26, 1536  ;;  %p594_p11 = scmp.lt.s32.totalorder %s760_s6, %s592_s26 }
  0x23   : > { %p589_p3 = pnand %p587_p1, %p573_p2  ;;  %p595_p5 = scmp.lt.s32.totalorder %s593_s27, %s586_s20 }
  0x25   : > { %p590_p12 = pneg %p589_p3  ;;  %p596_p7 = por %p595_p5, %p594_p11 }
  0x27   : > { %p597_p8 = pnand %p596_p7, %p590_p12 }
  0x29   : > { %600 = shalt.err (!%p597_p8)
}
  0x2a   : > { %s670_s28 = smov 256   ;;  %s671_s29 = smov 128  }
  0x2b   : > { %s672_s5 = smov 8   ;;  %p156_p9 = scmp.lt.s32.totalorder %s667_s15, 3 }
  0x2c   : > { %496 = dma.hbm_to_vmem [thread:$0]  (!%p756_p13), %s754_s30, 768, %s760_s6, %s763_s7, %s670_s28, %s671_s29, %s672_s5  }
  0x2d   : > { %p885_p0 = scmp.ge.s32.totalorder %s667_s15, 1 }
  0x2f   : > { %p157_p2 = pnand %p885_p0, %p156_p9 }
  0x30   : > { %s795_s8 = sand.u32 (!%p157_p2), 1, %s659_s13  }
  0x31   : > { %160 = sbr.rel (%p157_p2) target bundleno = 333 (0x14d), region = 32  ;;  %s163_s10 = scalar_lea.sflag (!%p157_p2), [#allocation3], %s795_s8 }
  0x32   : > { %s488_s9 = smul.u32 (!%p157_p2), 48, %s795_s8 }
  0x34   : > { %s166_s11 = scalar_lea.vmem (!%p157_p2), [#allocation2], %s488_s9 }
  0x38   : > { %646 = dma.done.wait (%p734_p6), %s163_s10, 768  }
  0x39   : > { %648 = vsyncadd (%p734_p6), %s163_s10, 4294966528  ;;  %v673_v0 = vmov 0   ;;  %v803_v1 = vld [vmem:[%s166_s11] sm:$0xff]  ;;  %v193_v2 = vld [vmem:[%s166_s11 + $0x8] sm:$0xff]  ;;  %vm271_vm0 = vcmask 1045504   ;;  %vm264_vm1 = vcmask 359424  }
  0x3a   : > { %310 = vmatprep.mubr.bf16.mxu0 %v673_v0  ;;  %320 = vmatprep.mubr.bf16.mxu1 %v673_v0  ;;  %v464_v3 = vcombine.high %v803_v1, %v193_v2  ;;  %v463_v4 = vcombine.low %v803_v1, %v193_v2  ;;  %v543_v5 = vld [vmem:[%s166_s11 + $0x14] ss:$8 sps:$4 sm:$0xff]   ;;  %v545_v6 = vld [vmem:[%s166_s11 + $0x10] ss:$8 sps:$4 sm:$0xff]   ;;  %v331_v46 = vunpack.c.l.bf16 %v803_v1  ;;  %v332_v49 = vunpack.c.h.bf16 %v803_v1  ;;  %s460_s29 = sshll.u32 %s795_s8, 4  ;;  %s480_s5 = sshll.u32 %s716_s16, 8 }
  0x3b   : > { %539 = vset.pattern.permute.xlu0 %v673_v0  ;;  %540 = vset.pattern.permute.xlu1 %v673_v0  ;;  %v546_v7 = vld [vmem:[%s166_s11 + $0x24] ss:$8 sps:$4 sm:$0x3f]   ;;  %v548_v8 = vld [vmem:[%s166_s11 + $0x20] ss:$8 sps:$4 sm:$0x3f]   ;;  %s832_s30 = scalar_lea.hbm %s879_s3, %s480_s5 }
  0x3c   : > { %278 = vmatprep.subr.bf16.mxu0 %v464_v3  ;;  %481 = vmatprep.subr.bf16.mxu1 %v464_v3  ;;  %v205_v9 = vld [vmem:[%s878_s2 + $0x18] sm:$0xff]  ;;  %v204_v10 = vld [vmem:[%s878_s2 + $0x10] sm:$0xff]  ;;  %v203_v11 = vld [vmem:[%s878_s2 + $0x8] sm:$0xff]  ;;  %v273_v13 = vsel %vm271_vm0, %v548_v8, 0  ;;  %s188_s9 = scalar_lea.vmem [#allocation5], %s460_s29  ;;  %s370_s4 = scalar_lea.sflag [#allocation4], %s795_s8 }
  0x3d   : > { %279 = vmatpush1.bf16.msra.mxu0 %v463_v4  ;;  %484 = vmatpush1.bf16.msra.mxu1 %v463_v4  ;;  %v202_v12 = vld [vmem:[%s878_s2] sm:$0xff]  ;;  %v550_v15 = vld [vmem:[%s877_s1 + $0x8] sm:$0xff]   ;;  %s384_s10 = sshll.u32 %s188_s9, 4  ;;  %p886_p11 = scmp.ne.s32.totalorder %s882_s23, 0  ;;  %s834_s10 = int_to_ptr.vmem [resolvable:$true] %s384_s10 }
  0x3e   : > { %280 = vmatprep.subr.bf16.mxu0 %v543_v5  ;;  %482 = vmatprep.subr.bf16.mxu1 %v543_v5  ;;  %v549_v14 = vld [vmem:[%s877_s1] sm:$0xff]   ;;  %s601_s6 = scalar_lea.vmem %s834_s10, 256  ;;  %s674_s16 = smov [#allocation5]  }
  0x3f   : > { %223 = vperm.xlu0 %539, %v205_v9   ;;  %218 = vperm.xlu1 %540, %v204_v10   ;;  %p602_p6 = scmp.ne.s32.totalorder %s834_s10, %s601_s6  ;;  %s605_s7 = sshll.u32 %s674_s16, 4  ;;  %s606_s7 = int_to_ptr.vmem [resolvable:$false] %s605_s7 }
  0x40   : > { %s607_s17 = scalar_lea.vmem %s606_s7, 512  ;;  %p608_p4 = scmp.lt.s32.totalorder %s834_s10, %s606_s7 }
  0x41   : > { %281 = vmatpush1.bf16.msra.mxu0 %v545_v6  ;;  %485 = vmatpush1.bf16.msra.mxu1 %v545_v6  ;;  %p603_p12 = pnand %p602_p6, %p886_p11  ;;  %p609_p10 = scmp.lt.s32.totalorder %s607_s17, %s601_s6 }
  0x42   : > { %469 = vmatprep.subr.msk.bf16.mxu0 %vm271_vm0, %v546_v7  ;;  %483 = vmatprep.subr.msk.bf16.mxu1 %vm271_vm0, %v546_v7 }
  0x43   : > { %213 = vperm.xlu0 %539, %v203_v11   ;;  %208 = vperm.xlu1 %540, %v202_v12   ;;  %p604_p13 = pneg %p603_p12  ;;  %p610_p1 = por %p609_p10, %p608_p4 }
  0x45   : > { %283 = vmatpush1.bf16.msra.mxu0 %v273_v13  ;;  %486 = vmatpush1.bf16.msra.mxu1 %v273_v13  ;;  %p611_p3 = pnand %p610_p1, %p604_p13 }
  0x48   : > { %470 = vmatmul.mubr.msk.bf16.vlgmr.msra.gmra.mrb[0].mxu0 %vm264_vm1, %v549_v14  ;;  %471 = vmatmul.mubr.msk.bf16.vlgmr.msra.gmra.mrb[0].mxu1 %vm264_vm1, %v550_v15 }
  0xbe   : > { %v224_v16 = vpop.permute.xlu0 %223  ;;  %v219_v17 = vpop.permute.xlu1 %218 }
  0xc2   : > { %v214_v18 = vpop.permute.xlu0 %213  ;;  %v209_v19 = vpop.permute.xlu1 %208 }
 0x11b   : > { %v312_v20 = vpop.f32.mrb[0].mxu0  ;;  %v322_v21 = vpop.f32.mrb[0].mxu1 }
 0x11c   : > { %v323_v22 = vadd.f32 %v322_v21, %v219_v17  ;;  %v314_v23 = vpop.f32.mrb[1].mxu0  ;;  %v324_v24 = vpop.f32.mrb[1].mxu1  ;;  %v313_v28 = vadd.f32 %v312_v20, %v209_v19 }
 0x11d   : > { %v325_v25 = vadd.f32 %v324_v24, %v219_v17  ;;  %v316_v26 = vpop.f32.mrb[2].mxu0  ;;  %v326_v27 = vpop.f32.mrb[2].mxu1  ;;  %v315_v33 = vadd.f32 %v314_v23, %v209_v19 }
 0x11e   : > { %551 = vtanh.f32 %v323_v22  ;;  %v317_v29 = vadd.f32 %v316_v26, %v214_v18  ;;  %v327_v30 = vadd.f32 %v326_v27, %v224_v16  ;;  %v318_v31 = vpop.f32.mrb[3].mxu0  ;;  %v328_v32 = vpop.f32.mrb[3].mxu1  ;;  %v335_v38 = vsub.f32 0.0, %v313_v28 }
 0x11f   : > { %553 = vtanh.f32 %v325_v25  ;;  %v319_v34 = vadd.f32 %v318_v31, %v214_v18  ;;  %v329_v35 = vadd.f32 %v328_v32, %v224_v16  ;;  %v336_v39 = vsub.f32 0.0, %v315_v33 }
 0x120   : > { %555 = vtanh.f32 %v317_v29  ;;  %v472_v36 = vmul.f32 -1.442695, %v327_v30  ;;  %v337_v40 = vmax.f32 %v335_v38, 0.0  ;;  %v333_v42 = vmax.f32 %v313_v28, 0.0 }
 0x121   : > { %557 = vtanh.f32 %v319_v34  ;;  %v473_v37 = vmul.f32 -1.442695, %v329_v35  ;;  %v338_v41 = vmax.f32 %v336_v39, 0.0  ;;  %v334_v44 = vmax.f32 %v315_v33, 0.0 }
 0x122   : > { %559 = vpow2.f32 %v472_v36 }
 0x123   : > { %561 = vpow2.f32 %v473_v37 }
 0x124   : > { %563 = vtanh.f32 %v331_v46 }
 0x125   : > { %565 = vtanh.f32 %v332_v49 }
 0x128   : > { %v552_v43 = vpop.eup %551 }
 0x129   : > { %v554_v45 = vpop.eup %553  ;;  %v357_v47 = vmul.f32 %v552_v43, %v337_v40 }
 0x12a   : > { %v556_v48 = vpop.eup %555  ;;  %v358_v50 = vmul.f32 %v554_v45, %v338_v41 }
 0x12b   : > { %v558_v51 = vpop.eup %557  ;;  %v355_v52 = vmul.f32 %v556_v48, %v333_v42 }
 0x12c   : > { %v560_v53 = vpop.eup %559  ;;  %v356_v54 = vmul.f32 %v558_v51, %v334_v44 }
 0x12d   : > { %v562_v55 = vpop.eup %561  ;;  %v349_v56 = vadd.f32 1.0, %v560_v53  ;;  %v359_v57 = vadd.f32 %v357_v47, %v355_v52 }
 0x12e   : > { %v350_v58 = vadd.f32 1.0, %v562_v55  ;;  %v360_v59 = vadd.f32 %v358_v50, %v356_v54  ;;  %v564_v60 = vpop.eup %563 }
 0x12f   : > { %567 = vrcp.f32 %v349_v56  ;;  %v566_v61 = vpop.eup %565 }
 0x130   : > { %569 = vrcp.f32 %v350_v58 }
 0x139   : > { %v568_v62 = vpop.eup %567 }
 0x13a   : > { %v570_v63 = vpop.eup %569  ;;  %v363_v0 = vmul.f32 %v568_v62, %v564_v60 }
 0x13b   : > { %v364_v1 = vmul.f32 %v570_v63, %v566_v61 }
 0x13c   : > { %v365_v2 = vadd.f32 %v363_v0, %v359_v57 }
 0x13d   : > { %v366_v3 = vadd.f32 %v364_v1, %v360_v59 }
 0x13e   : > { %367 = vst [vmem:[%s188_s9] sm:$0xff] %v365_v2 }
 0x13f   : > { %368 = vst [vmem:[%s188_s9 + $0x8] sm:$0xff] %v366_v3 }
 0x140   : > { %614 = shalt.err (!%p611_p3)
}
 0x141   : > { %s615_s8 = scalar_lea.hbm %s832_s30, 256  ;;  %s619_s25 = scalar_lea.hbm %s879_s3, 512 }
 0x142   : > { %p616_p5 = scmp.ne.s32.totalorder %s832_s30, %s615_s8  ;;  %p620_p9 = scmp.lt.u32.totalorder %s832_s30, %s879_s3 }
 0x143   : > { %p621_p0 = scmp.lt.u32.totalorder %s619_s25, %s615_s8  ;;  %p623_p6 = scmp.lt.u32.totalorder %s615_s8, %s832_s30 }
 0x144   : > { %p617_p7 = pnand %p616_p5, %p886_p11 }
 0x145   : > { %p622_p2 = por %p621_p0, %p620_p9 }
 0x146   : > { %p618_p8 = pneg %p617_p7 }
 0x147   : > { %p624_p12 = por %p623_p6, %p622_p2 }
 0x149   : > { %p625_p13 = pnand %p624_p12, %p618_p8 }
 0x14b   : > { %628 = shalt.err (!%p625_p13)
}
 0x14c   : > { %491 = dma.vmem_to_hbm [thread:$0]  (%p886_p11), %s834_s10, 256, %s832_s30, %s370_s4  }
 0x14d PF: > { %s396_s28 = sand.u32 1, %s655_s12   ;;  %p887_p4 = scmp.ne.s32.totalorder %s883_s24, 0 }
 0x14e   : > { %p888_p10 = scmp.ge.s32.totalorder %s667_s15, 2  ;;  %s397_s29 = scalar_lea.sflag [#allocation4], %s396_s28 }
 0x150   : > { %p498_p1 = pnand %p888_p10, %p887_p4 }
 0x152   : > { %650 = dma.done.wait (!%p498_p1), %s397_s29, 256  }
 0x153   : > { %652 = vsyncadd (!%p498_p1), %s397_s29, 4294967040  ;;  %p16_p3 = scmp.ge.s32.totalorder %s720_s18, 4   ;;  %s889_s12 = smov %s659_s13 }
 0x154   : > { %s890_s13 = smov %s663_s14  ;;  %s891_s14 = smov %s732_s21 }
 0x155   : > { %s892_s15 = smov %s720_s18  ;;  %18 = sbr.rel (!%p16_p3) target bundleno = 5 (0x5), region = 77 }
 0x15c   :  { %402 = vsyncpa [#allocation3], 1 }
 0x15d   :  { %404 = vsyncpa [#allocation3 + $0x1], 1 }
 0x15e   :  { %405 = vsyncpa [#allocation4], 1 }
 0x15f   :  { %407 = vsyncpa [#allocation4 + $0x1], 1 }

</bundles_post_ra>
